<compile_context>
chip_gen: v6e
topology: v6e:2x2x1
jax: 0.10.0
libtpu: 0.0.40
codegen_flags: <defaults>
</compile_context>

<pallas_src>
import jax
import jax.numpy as jnp
from jax.experimental import pallas as pl
from jax.experimental.pallas import tpu as pltpu

BN_EPS = 1e-5
_MIB = 1024 * 1024


def _round_up(x, m):
    return ((x + m - 1) // m) * m


# --------------------------------------------------------------------------
# Kernels
# --------------------------------------------------------------------------
def _encoder_kernel(ratings_ref, w_ref, add_ref, lat_ref, acc_ref):
    """latent = relu(ratings @ w_enc_folded + add_folded).

    add_folded = user_emb*scale + (b_enc - bn_mean)*scale + bn_beta  (f32).
    Grid = (B_pad // tile_b, N_k // tile_k); k (reduction over items) is the
    innermost "arbitrary" axis; acc_ref is a (tile_b, L_pad) f32 accumulator.
    """
    k = pl.program_id(1)

    @pl.when(k == 0)
    def _():
        acc_ref[...] = jnp.zeros_like(acc_ref)

    acc_ref[...] += jnp.dot(ratings_ref[...], w_ref[...],
                            preferred_element_type=jnp.float32)

    @pl.when(k == pl.num_programs(1) - 1)
    def _():
        # Epilogue kept in f32 (v5e VPU/EUP have no bf16 path).
        h = acc_ref[...] + add_ref[...]
        lat_ref[...] = jnp.maximum(h, 0.0).astype(lat_ref.dtype)


def _decoder_kernel(lat_ref, w_ref, b_ref, out_ref):
    """out = latent @ w_dec + b_dec, one (tile_b, tile_n) output tile per step."""
    out = jnp.dot(lat_ref[...], w_ref[...], preferred_element_type=jnp.float32)
    out_ref[...] = (out + b_ref[...]).astype(out_ref.dtype)


# --------------------------------------------------------------------------
# Wrapper
# --------------------------------------------------------------------------
def cdae_forward(user_ids, ratings, params, *, tile_b=512, tile_k=2048,
                 tile_n=2048, compute_dtype=jnp.bfloat16, out_dtype=None):
    """Eval-mode CDAE forward.

    ratings:  [B, N] float32 implicit-feedback vector per user.
    user_ids: [B] int32.
    Returns [B, N] in `out_dtype` (defaults to compute_dtype).
    """
    B, N = ratings.shape
    L = params["w_enc"].shape[1]
    out_dtype = compute_dtype if out_dtype is None else out_dtype
    f32 = jnp.float32
    sz = jnp.dtype(compute_dtype).itemsize
    out_sz = jnp.dtype(out_dtype).itemsize

    # ---- tile geometry (padded; handles non-divisible shapes) ----
    L_pad = _round_up(L, 128)

    B8 = _round_up(B, 8)
    tile_b = _round_up(min(tile_b, B8), 8)
    if B8 // tile_b < 2 and B8 >= 16:
        # Keep >= 2 steps on the batch ("parallel") axis for v7x megacore.
        tile_b = _round_up((B8 + 1) // 2, 8)
    B_pad = _round_up(B8, tile_b)

    tile_k = min(tile_k, _round_up(N, 128))
    N_k = _round_up(N, tile_k)
    tile_n = min(tile_n, _round_up(N, 128))
    N_n = _round_up(N, tile_n)

    # ---- fold BatchNorm (eval running stats) + encoder bias offline ----
    s = params["bn_gamma"] * jax.lax.rsqrt(params["bn_var"] + BN_EPS)      # [L]
    w_enc_f = (params["w_enc"] * s).astype(compute_dtype)                  # [N, L]
    add_f = (params["user_emb"][user_ids] * s
             + (params["b_enc"] - params["bn_mean"]) * s
             + params["bn_beta"]).astype(f32)                              # [B, L] f32
    w_dec_c = params["w_dec"].astype(compute_dtype)                        # [L, N]
    b_dec_r = params["b_dec"].astype(f32).reshape(1, N)                    # [1, N] f32
    ratings_c = ratings.astype(compute_dtype)

    # ---- zero-pad to tile multiples (zeros contribute nothing to the dots) ----
    ratings_p = jnp.pad(ratings_c, ((0, B_pad - B), (0, N_k - N)))
    w_enc_p = jnp.pad(w_enc_f, ((0, N_k - N), (0, L_pad - L)))
    add_p = jnp.pad(add_f, ((0, B_pad - B), (0, L_pad - L)))
    w_dec_p = jnp.pad(w_dec_c, ((0, L_pad - L), (0, N_n - N)))
    b_dec_p = jnp.pad(b_dec_r, ((0, 0), (0, N_n - N)))

    # ---- explicit scoped-VMEM budget (covers v5e 16 MiB default, v7x 64 MiB) ----
    enc_need = (2 * (tile_b * tile_k * sz        # ratings tile (double-buffered)
                     + tile_k * L_pad * sz       # w_enc tile
                     + tile_b * L_pad * 4        # add tile (f32)
                     + tile_b * L_pad * sz)      # latent out tile
                + tile_b * L_pad * 4)            # f32 accumulator scratch
    dec_need = 2 * (tile_b * L_pad * sz          # latent tile
                    + L_pad * tile_n * sz        # w_dec tile
                    + tile_n * 4                 # b_dec tile (f32)
                    + tile_b * tile_n * out_sz)  # output tile

    def _limit(need):
        return int(min(max(int(need * 1.5), 32 * _MIB), 64 * _MIB))

    # ---- encoder: tiled K-reduction over the item dimension ----
    latent = pl.pallas_call(
        _encoder_kernel,
        out_shape=jax.ShapeDtypeStruct((B_pad, L_pad), compute_dtype),
        grid_spec=pltpu.PrefetchScalarGridSpec(
            num_scalar_prefetch=0,
            grid=(B_pad // tile_b, N_k // tile_k),
            in_specs=[
                pl.BlockSpec((tile_b, tile_k), lambda i, k: (i, k)),  # ratings
                pl.BlockSpec((tile_k, L_pad), lambda i, k: (k, 0)),   # w_enc (folded)
                pl.BlockSpec((tile_b, L_pad), lambda i, k: (i, 0)),   # uemb+bias (f32)
            ],
            out_specs=pl.BlockSpec((tile_b, L_pad), lambda i, k: (i, 0)),
            scratch_shapes=[pltpu.VMEM((tile_b, L_pad), jnp.float32)],
        ),
        compiler_params=pltpu.CompilerParams(
            dimension_semantics=("parallel", "arbitrary"),
            vmem_limit_bytes=_limit(enc_need)),
    )(ratings_p, w_enc_p, add_p)

    # ---- decoder: column-tiled Linear(latent -> n_item_ratings) ----
    out_p = pl.pallas_call(
        _decoder_kernel,
        out_shape=jax.ShapeDtypeStruct((B_pad, N_n), out_dtype),
        grid_spec=pltpu.PrefetchScalarGridSpec(
            num_scalar_prefetch=0,
            grid=(B_pad // tile_b, N_n // tile_n),
            in_specs=[
                pl.BlockSpec((tile_b, L_pad), lambda i, j: (i, 0)),   # latent
                pl.BlockSpec((L_pad, tile_n), lambda i, j: (0, j)),   # w_dec
                pl.BlockSpec((1, tile_n), lambda i, j: (0, j)),       # b_dec (f32)
            ],
            out_specs=pl.BlockSpec((tile_b, tile_n), lambda i, j: (i, j)),
        ),
        compiler_params=pltpu.CompilerParams(
            dimension_semantics=("parallel", "parallel"),
            vmem_limit_bytes=_limit(dec_need)),
    )(latent, w_dec_p, b_dec_p)

    return out_p[:B, :N]


# --------------------------------------------------------------------------
# Parameters / reference
# --------------------------------------------------------------------------
def init_params(key, n_users, n_item_ratings, latent_dim):
    """Deterministic synthetic parameters matching module shapes."""
    ks = jax.random.split(key, 9)
    w_enc = jax.random.normal(ks[0], (n_item_ratings, latent_dim), jnp.float32) * 0.02
    b_enc = jax.random.normal(ks[1], (latent_dim,), jnp.float32) * 0.01
    user_emb = jax.random.normal(ks[2], (n_users, latent_dim), jnp.float32) * 0.02
    w_dec = jax.random.normal(ks[3], (latent_dim, n_item_ratings), jnp.float32) * 0.02
    b_dec = jax.random.normal(ks[4], (n_item_ratings,), jnp.float32) * 0.01
    return dict(
        w_enc=w_enc, b_enc=b_enc, user_emb=user_emb,
        bn_gamma=1.0 + 0.1 * jax.random.normal(ks[5], (latent_dim,), jnp.float32),
        bn_beta=0.1 * jax.random.normal(ks[6], (latent_dim,), jnp.float32),
        bn_mean=0.1 * jax.random.normal(ks[7], (latent_dim,), jnp.float32),
        bn_var=jax.random.uniform(ks[8], (latent_dim,), jnp.float32, 0.5, 1.5),
        w_dec=w_dec, b_dec=b_dec,
    )


def cdae_reference(user_ids, ratings, p):
    h = ratings @ p["w_enc"] + p["b_enc"] + p["user_emb"][user_ids]
    h = (h - p["bn_mean"]) / jnp.sqrt(p["bn_var"] + BN_EPS)
    h = h * p["bn_gamma"] + p["bn_beta"]
    h = jnp.maximum(h, 0.0)
    return h @ p["w_dec"] + p["b_dec"]


# --------------------------------------------------------------------------
# Demo / self-test
# --------------------------------------------------------------------------
if __name__ == "__main__":
    # Deliberately non-divisible shapes: B=56 (not /32), N=600 (not /128),
    # L=200 (not /128) to exercise the padding + lane-dense L_pad path.
    B, N_USERS, N_ITEMS, LATENT = 56, 16, 600, 200

    key = jax.random.PRNGKey(0)
    k_par, k_uid, k_rat = jax.random.split(key, 3)

    params = init_params(k_par, N_USERS, N_ITEMS, LATENT)
    user_ids = jax.random.randint(k_uid, (B,), 0, N_USERS, dtype=jnp.int32)
    # sparse-ish implicit-feedback ratings vector per user (0/1: exact in bf16)
    ratings = (jax.random.uniform(k_rat, (B, N_ITEMS)) < 0.1).astype(jnp.float32)

    ref = cdae_reference(user_ids, ratings, params)

    # Default path: bf16 streaming + bf16 output, f32 accumulation, large tiles.
    out_bf16 = jax.block_until_ready(cdae_forward(user_ids, ratings, params))
    assert out_bf16.shape == (B, N_ITEMS)
    assert jnp.allclose(out_bf16.astype(jnp.float32), ref, atol=5e-2, rtol=5e-2)

    # f32 path with small tiles exercising batch/K/N tiling + the K accumulator.
    out_f32 = jax.block_until_ready(
        cdae_forward(user_ids, ratings, params, tile_b=32, tile_k=128,
                     tile_n=256, compute_dtype=jnp.float32))
    assert out_f32.shape == (B, N_ITEMS)
    assert jnp.allclose(out_f32, ref, atol=1e-4, rtol=1e-4)

    print("KERNEL_OK")
</pallas_src>

<mosaic_0001>
module attributes {stable_mosaic.version = 11 : i64} {
  func.func @_encoder_kernel(%arg0: i32, %arg1: i32, %arg2: memref<32x640xbf16, #tpu.memory_space<vmem>>, %arg3: memref<640x256xbf16, #tpu.memory_space<vmem>>, %arg4: memref<32x256xf32, #tpu.memory_space<vmem>>, %arg5: memref<32x256xbf16, #tpu.memory_space<vmem>>, %arg6: memref<32x256xf32, #tpu.memory_space<vmem>>) attributes {dimension_semantics = [#tpu.dimension_semantics<parallel>, #tpu.dimension_semantics<arbitrary>], iteration_bounds = array<i64: 2, 1>, scalar_prefetch = 0 : i64, scratch_operands = 1 : i64, tpu.core_type = #tpu.core_type<tc>, window_params = [{transform_indices = @transform_0, window_bounds = array<i64: 32, 640>}, {transform_indices = @transform_1, window_bounds = array<i64: 640, 256>}, {transform_indices = @transform_2, window_bounds = array<i64: 32, 256>}, {transform_indices = @transform_3, window_bounds = array<i64: 32, 256>}]} {
    %c0_i32 = arith.constant 0 : i32
    %0 = arith.cmpi eq, %arg1, %c0_i32 : i32
    %1 = arith.extui %0 : i1 to i32
    %c0_i32_0 = arith.constant 0 : i32
    %2 = arith.cmpi ne, %1, %c0_i32_0 : i32
    scf.if %2 {
      %cst_10 = arith.constant 0.000000e+00 : f32
      %12 = vector.broadcast %cst_10 : f32 to vector<32x256xf32>
      %c0_11 = arith.constant 0 : index
      %c0_12 = arith.constant 0 : index
      %13 = vector.load %arg6[%c0_11, %c0_12] : memref<32x256xf32, #tpu.memory_space<vmem>>, vector<32x256xf32>
      tpu.vector_store %arg6[%c0_11, %c0_12], %12 {strides = array<i32>} : memref<32x256xf32, #tpu.memory_space<vmem>>, vector<32x256xf32>,
    } else {
    }
    %c0 = arith.constant 0 : index
    %c0_1 = arith.constant 0 : index
    %3 = vector.load %arg6[%c0, %c0_1] : memref<32x256xf32, #tpu.memory_space<vmem>>, vector<32x256xf32>
    %c0_2 = arith.constant 0 : index
    %c0_3 = arith.constant 0 : index
    %4 = vector.load %arg2[%c0_2, %c0_3] : memref<32x640xbf16, #tpu.memory_space<vmem>>, vector<32x640xbf16>
    %c0_4 = arith.constant 0 : index
    %c0_5 = arith.constant 0 : index
    %5 = vector.load %arg3[%c0_4, %c0_5] : memref<640x256xbf16, #tpu.memory_space<vmem>>, vector<640x256xbf16>
    %cst = arith.constant dense<0.000000e+00> : vector<32x256xf32>
    %6 = tpu.matmul %4, %5, %cst {dimension_numbers = #tpu.dot_dimension_numbers<[1], [0], [0], [1], [0, 0, 1, 1], [], []>} : vector<32x640xbf16>, vector<640x256xbf16>, vector<32x256xf32> -> vector<32x256xf32>
    %7 = arith.addf %3, %6 : vector<32x256xf32>
    %c0_6 = arith.constant 0 : index
    %c0_7 = arith.constant 0 : index
    %8 = vector.load %arg6[%c0_6, %c0_7] : memref<32x256xf32, #tpu.memory_space<vmem>>, vector<32x256xf32>
    tpu.vector_store %arg6[%c0_6, %c0_7], %7 {strides = array<i32>} : memref<32x256xf32, #tpu.memory_space<vmem>>, vector<32x256xf32>,
    %c0_i32_8 = arith.constant 0 : i32
    %9 = arith.cmpi eq, %arg1, %c0_i32_8 : i32
    %10 = arith.extui %9 : i1 to i32
    %c0_i32_9 = arith.constant 0 : i32
    %11 = arith.cmpi ne, %10, %c0_i32_9 : i32
    scf.if %11 {
      %c0_10 = arith.constant 0 : index
      %c0_11 = arith.constant 0 : index
      %12 = vector.load %arg6[%c0_10, %c0_11] : memref<32x256xf32, #tpu.memory_space<vmem>>, vector<32x256xf32>
      %c0_12 = arith.constant 0 : index
      %c0_13 = arith.constant 0 : index
      %13 = vector.load %arg4[%c0_12, %c0_13] : memref<32x256xf32, #tpu.memory_space<vmem>>, vector<32x256xf32>
      %14 = arith.addf %12, %13 : vector<32x256xf32>
      %cst_14 = arith.constant 0.000000e+00 : f32
      %15 = vector.broadcast %cst_14 : f32 to vector<32x256xf32>
      %16 = arith.maximumf %14, %15 : vector<32x256xf32>
      %17 = arith.truncf %16 : vector<32x256xf32> to vector<32x256xbf16>
      %c0_15 = arith.constant 0 : index
      %c0_16 = arith.constant 0 : index
      %18 = vector.load %arg5[%c0_15, %c0_16] : memref<32x256xbf16, #tpu.memory_space<vmem>>, vector<32x256xbf16>
      tpu.vector_store %arg5[%c0_15, %c0_16], %17 {strides = array<i32>} : memref<32x256xbf16, #tpu.memory_space<vmem>>, vector<32x256xbf16>,
    } else {
    }
    return
  }
  func.func @transform_0(%arg0: i32, %arg1: i32) -> (i32, i32) {
    %c0_i32 = arith.constant 0 : i32
    return %arg0, %arg1 : i32, i32
  }
  func.func @transform_1(%arg0: i32, %arg1: i32) -> (i32, i32) {
    %c0_i32 = arith.constant 0 : i32
    %c0_i32_0 = arith.constant 0 : i32
    return %arg1, %c0_i32 : i32, i32
  }
  func.func @transform_2(%arg0: i32, %arg1: i32) -> (i32, i32) {
    %c0_i32 = arith.constant 0 : i32
    %c0_i32_0 = arith.constant 0 : i32
    return %arg0, %c0_i32 : i32, i32
  }
  func.func @transform_3(%arg0: i32, %arg1: i32) -> (i32, i32) {
    %c0_i32 = arith.constant 0 : i32
    %c0_i32_0 = arith.constant 0 : i32
    return %arg0, %c0_i32 : i32, i32
  }
}

</mosaic_0001>

<bundles_post_ra>
// kernel: tpu_custom_call.1
= control target key start
LH: loop header
LB: loop body
LE: loop exit
PB: predicated region body
PF: predicated region fallthrough
CT: control target
= control target key end

     0   :  { %8 = vsyncpa [#allocation4], 0  ;;  %s2008_s0 = inlined_call_operand.hbm [shape: bf16[64,640], index: 0, kind: input, shape index: {}]   ;;  %s2009_s1 = inlined_call_operand.hbm [shape: bf16[640,256], index: 1, kind: input, shape index: {}]   ;;  %s2010_s2 = inlined_call_operand.hbm [shape: f32[64,256], index: 2, kind: input, shape index: {}]   ;;  %s2011_s3 = inlined_call_operand.hbm [shape: bf16[64,256], index: 3, kind: output, shape index: {}]  }
   0x1   :  { %10 = vsyncpa [#allocation4 + $0x1], 0 }
   0x2   :  { %11 = vsyncpa [#allocation7], 0 }
   0x3   :  { %12 = vsyncpa [#allocation5], 0 }
   0x4   :  { %14 = vsyncpa [#allocation5 + $0x1], 0  ;;  %s1776_s12 = smov 0   ;;  %s1778_s13 = smov 0  }
   0x5   :  { %s1780_s14 = smov 0   ;;  %s1782_s15 = smov 0  }
   0x6   :  { %s1784_s16 = smov 0   ;;  %s1786_s17 = smov 0  }
   0x7 LB: > { %s32_s18 = sadd.s32 1, %s1737_s16  ;;  %s41_s19 = sadd.s32 1, %s1729_s14  ;;  %s1741_s17 = sphi %s1786_s17, %s20_s17   ;;  %s1737_s16 = sphi %s1784_s16, %s2028_s16   ;;  %s1733_s15 = sphi %s1782_s15, %s2027_s15   ;;  %s1729_s14 = sphi %s1780_s14, %s2026_s14   ;;  %s1725_s13 = sphi %s1778_s13, %s2025_s13   ;;  %s1721_s12 = sphi %s1776_s12, %s2024_s12  }
   0x8   : > { %p34_p0 = scmp.ge.s32.totalorder %s32_s18, 2  ;;  %p48_p1 = scmp.ne.s32.totalorder %s1729_s14, %s1725_s13 }
   0x9   : > { %p49_p2 = scmp.eq.s32.totalorder %s1741_s17, 0  ;;  %p1376_p5 = scmp.lt.s32.totalorder %s1741_s17, 2 }
   0xa   : > { %s2030_s18 = smov (%p34_p0, %s32_s18), 0  ;;  %s173_s21 = sand.u32 1, %s1741_s17  }
   0xb   : > { %p50_p4 = por %p49_p2, %p48_p1  ;;  %s36_s20 = ssub.s32 %s1737_s16, %s2030_s18 }
   0xc   : > { %p39_p6 = scmp.eq.s32.totalorder %s36_s20, 0  ;;  %s175_s22 = sand.u32 1, %s1729_s14  }
   0xd   : > { %s1348_s23 = smul.u32 1280, %s1737_s16  ;;  %p1829_p7 = pnand %p1376_p5, %p50_p4 }
   0xe   : > { %s1824_s24 = scalar_select %p39_p6, %s1729_s14, %s41_s19  }
   0xf   : > { %s1347_s25 = smul.u32 80, %s175_s22  ;;  %s186_s28 = scalar_lea.hbm %s2008_s0, %s1348_s23 }
  0x10   : > { %s1833_s5 = sshll.u32 %s175_s22, 6  ;;  %s1835_s6 = scalar_lea.sflag [#allocation4], %s173_s21 }
  0x11   : > { %s177_s30 = scalar_lea.vmem [#allocation3], %s1347_s25  ;;  %p2012_p8 = pneg %p1829_p7 }
  0x12   : > { %s187_s4 = sshll.u32 %s177_s30, 4  ;;  %s1743_s8 = smov [#allocation3]   ;;  %s188_s4 = int_to_ptr.vmem [resolvable:$true] %s187_s4 }
  0x13   : > { %s1584_s7 = scalar_lea.vmem %s188_s4, 1280  ;;  %s1589_s9 = sshll.u32 %s1743_s8, 4  ;;  %s1590_s9 = int_to_ptr.vmem [resolvable:$false] %s1589_s9 }
  0x14   : > { %p1585_p9 = scmp.ne.s32.totalorder %s188_s4, %s1584_s7  ;;  %s1591_s10 = scalar_lea.vmem %s1590_s9, 2560 }
  0x15   : > { %p1592_p12 = scmp.lt.s32.totalorder %s188_s4, %s1590_s9  ;;  %p1593_p13 = scmp.lt.s32.totalorder %s1591_s10, %s1584_s7 }
  0x16   : > { %p1587_p10 = pnand %p1585_p9, %p2012_p8 }
  0x17   : > { %p1594_p0 = por %p1593_p13, %p1592_p12 }
  0x18   : > { %p1588_p11 = pneg %p1587_p10 }
  0x1a   : > { %p1595_p2 = pnand %p1594_p0, %p1588_p11 }
  0x1c   : > { %1598 = shalt.err (!%p1595_p2)
}
  0x1d   : > { %s1744_s11 = smov 320   ;;  %s1745_s19 = smov 20  }
  0x1e   : > { %1367 = dma.hbm_to_vmem [thread:$0]  (!%p1829_p7), %s186_s28, 1280, %s188_s4, %s1835_s6, %s1744_s11, %s1744_s11, %s1745_s19  }
  0x1f   : > { %s1846_s20 = sadd.s32 4294967295, %s1741_s17   ;;  %s1208_s21 = sadd.s32 4294967294, %s1741_s17  }
  0x20   : > { %p54_p4 = scmp.ne.s32.totalorder %s1725_s13, %s1721_s12  ;;  %p2013_p5 = scmp.eq.s32.totalorder %s1846_s20, 0 }
  0x21   : > { %p130_p6 = scmp.eq.s32.totalorder %s1846_s20, 1  ;;  %p136_p9 = scmp.eq.s32.totalorder %s1208_s21, 1 }
  0x22   : > { %p1209_p10 = scmp.ge.s32.totalorder %s1741_s17, 1  ;;  %p1856_p11 = por %p2013_p5, %p54_p4 }
  0x23   : > { %p1863_p12 = por %p130_p6, %p48_p1  ;;  %p1867_p13 = por %p136_p9, %p54_p4 }
  0x24   : > { %p143_p0 = scmp.lt.s32.totalorder %s1741_s17, 3  ;;  %s1746_s27 = smov [#allocation6]  }
  0x25   : > { %s159_s28 = sshll.u32 %s1746_s27, 4  ;;  %s1324_s30 = sshll.u32 %s1737_s16, 10  ;;  %s160_s28 = int_to_ptr.vmem [resolvable:$true] %s159_s28 }
  0x26   : > { %p1872_p2 = pnand %p1209_p10, %p143_p0  ;;  %s201_s4 = scalar_lea.vmem [#allocation8], %s1833_s5 }
  0x27   : > { %s209_s7 = sshll.u32 %s201_s4, 4  ;;  %s1889_s11 = scalar_lea.hbm %s2010_s2, %s1324_s30  ;;  %s1891_s7 = int_to_ptr.vmem [resolvable:$true] %s209_s7 }
  0x28   : > { %p1360_p3 = pneg %p1872_p2  ;;  %s1610_s19 = scalar_lea.vmem %s160_s28, 10240 }
  0x29   : > { %p1611_p6 = scmp.ne.s32.totalorder %s160_s28, %s1610_s19  ;;  %p1618_p0 = scmp.lt.s32.totalorder %s160_s28, %s160_s28 }
  0x2a   : > { %p1882_p1 = pnand %p1360_p3, %p2013_p5  ;;  %p1619_p8 = scmp.lt.s32.totalorder %s1610_s19, %s1610_s19 }
  0x2c   : > { %p1601_p4 = pneg %p1882_p1  ;;  %p1620_p3 = por %p1619_p8, %p1618_p0 }
  0x2e   : > { %p1613_p9 = pnand %p1611_p6, %p1601_p4 }
  0x30   : > { %p1614_p10 = pneg %p1613_p9 }
  0x32   : > { %p1621_p5 = pnand %p1620_p3, %p1614_p10 }
  0x34   : > { %1624 = shalt.err (!%p1621_p5)
}
  0x35   : > { %s1747_s5 = smov 128   ;;  %s1748_s21 = smov 8  }
  0x36   : > { %1363 = dma.hbm_to_vmem [thread:$0]  (!%p1882_p1), %s2009_s1, 10240, %s160_s28, [#allocation7], %s1747_s5, %s1747_s5, %s1748_s21  }
  0x37   : > { %s1638_s4 = scalar_lea.vmem %s1891_s7, 1024  ;;  %p2020_p6 = pneg %p1829_p7 }
  0x38   : > { %p1639_p4 = scmp.ne.s32.totalorder %s1891_s7, %s1638_s4  ;;  %s1749_s9 = smov [#allocation8]  }
  0x39   : > { %s1643_s10 = sshll.u32 %s1749_s9, 4  ;;  %s1644_s10 = int_to_ptr.vmem [resolvable:$false] %s1643_s10 }
  0x3a   : > { %p1641_p9 = pnand %p1639_p4, %p2020_p6  ;;  %s1645_s19 = scalar_lea.vmem %s1644_s10, 2048 }
  0x3b   : > { %p1646_p5 = scmp.lt.s32.totalorder %s1891_s7, %s1644_s10  ;;  %p1647_p10 = scmp.lt.s32.totalorder %s1645_s19, %s1638_s4 }
  0x3c   : > { %p1642_p8 = pneg %p1641_p9 }
  0x3d   : > { %p1648_p0 = por %p1647_p10, %p1646_p5 }
  0x3f   : > { %p1649_p3 = pnand %p1648_p0, %p1642_p8 }
  0x41   : > { %1652 = shalt.err (!%p1649_p3)
}
  0x42   : > { %s1750_s8 = smov 256   ;;  %s1751_s28 = smov 16  }
  0x43   : > { %1370 = dma.hbm_to_vmem [thread:$0]  (!%p1829_p7), %s1889_s11, 1024, %s1891_s7, %s1835_s6, %s1750_s8, %s1750_s8, %s1751_s28  }
  0x44   : > { %221 = sbr.rel (%p1872_p2) target bundleno = 399 (0x18f), region = 32  ;;  %s223_s5 = sand.u32 (!%p1872_p2), 1, %s1846_s20  }
  0x45   : > { %s1915_s21 = sand.u32 (!%p1872_p2), 1, %s1725_s13   ;;  %s224_s30 = scalar_lea.sflag (!%p1872_p2), [#allocation4], %s223_s5 }
  0x46   : > { %s1349_s27 = smul.u32 (!%p1872_p2), 80, %s1915_s21 }
  0x48   : > { %s1918_s4 = scalar_lea.vmem (!%p1872_p2), [#allocation3], %s1349_s27 }
  0x49   : > { %1704 = dma.done.wait (%p1856_p11), %s224_s30, 1280  }
  0x4a   : > { %1706 = vsyncadd (%p1856_p11), %s224_s30, 4294966016  ;;  %p2021_p7 = scmp.eq.s32.totalorder %s1846_s20, 0 }
  0x4c   : > { %1708 = dma.done.wait (%p2021_p7), [#allocation7], 10240   ;;  %p2022_p2 = pmov %p2021_p7 }
  0x4d   : > { %s1221_s29 = sshll.u32 %s1915_s21, 6 }
  0x4e   : > { %1710 = vsyncadd (%p2022_p2), [#allocation7], 4294957056  ;;  %s1929_s6 = scalar_lea.vmem [#allocation8], %s1221_s29 }
  0x4f   : > { %1712 = dma.done.wait (%p1856_p11), %s224_s30, 1024  }
  0x50   : > { %1714 = vsyncadd (%p1856_p11), %s224_s30, 4294966272  ;;  %v1437_v0 = vld [vmem:[#allocation6 + $0x74] ss:$8 sps:$4 sm:$0xff]   ;;  %v1441_v2 = vld [vmem:[#allocation6 + $0x70] ss:$8 sps:$4 sm:$0xff]   ;;  %s1222_s20 = sshll.u32 %s1915_s21, 5 }
  0x51   : > { %v1439_v1 = vld [vmem:[#allocation6 + $0x174] ss:$8 sps:$4 sm:$0xff]   ;;  %838 = vmatprep.subr.bf16.mxu0 %v1437_v0  ;;  %v1442_v3 = vld [vmem:[#allocation6 + $0x170] ss:$8 sps:$4 sm:$0xff]   ;;  %v1443_v4 = vld [vmem:[#allocation6 + $0x64] ss:$8 sps:$4 sm:$0xff]  }
  0x52   : > { %891 = vmatprep.subr.bf16.mxu1 %v1439_v1  ;;  %839 = vmatpush1.bf16.msra.mxu0 %v1441_v2  ;;  %v1445_v5 = vld [vmem:[#allocation6 + $0x164] ss:$8 sps:$4 sm:$0xff]   ;;  %v1447_v6 = vld [vmem:[#allocation6 + $0x60] ss:$8 sps:$4 sm:$0xff]   ;;  %v1449_v8 = vld [vmem:[#allocation6 + $0x54] ss:$8 sps:$4 sm:$0xff]  }
  0x53   : > { %892 = vmatpush1.bf16.msra.mxu1 %v1442_v3  ;;  %840 = vmatprep.subr.bf16.mxu0 %v1443_v4  ;;  %v1448_v7 = vld [vmem:[#allocation6 + $0x160] ss:$8 sps:$4 sm:$0xff]   ;;  %v1451_v9 = vld [vmem:[#allocation6 + $0x154] ss:$8 sps:$4 sm:$0xff]   ;;  %v1453_v10 = vld [vmem:[#allocation6 + $0x50] ss:$8 sps:$4 sm:$0xff]  }
  0x54   : > { %893 = vmatprep.subr.bf16.mxu1 %v1445_v5  ;;  %v1454_v11 = vld [vmem:[#allocation6 + $0x150] ss:$8 sps:$4 sm:$0xff]   ;;  %v1455_v12 = vld [vmem:[#allocation6 + $0x44] ss:$8 sps:$4 sm:$0xff]   ;;  %v1459_v14 = vld [vmem:[#allocation6 + $0x40] ss:$8 sps:$4 sm:$0xff]  }
  0x55   : > { %v1457_v13 = vld [vmem:[#allocation6 + $0x144] ss:$8 sps:$4 sm:$0xff]   ;;  %v1460_v15 = vld [vmem:[#allocation6 + $0x140] ss:$8 sps:$4 sm:$0xff]   ;;  %v1461_v16 = vld [vmem:[#allocation6 + $0x34] ss:$8 sps:$4 sm:$0xff]  }
  0x56   : > { %841 = vmatpush1.bf16.msra.mxu0 %v1447_v6  ;;  %v1463_v17 = vld [vmem:[#allocation6 + $0x134] ss:$8 sps:$4 sm:$0xff]   ;;  %v1465_v18 = vld [vmem:[#allocation6 + $0x30] ss:$8 sps:$4 sm:$0xff]   ;;  %v1467_v20 = vld [vmem:[#allocation6 + $0x24] ss:$8 sps:$4 sm:$0xff]  }
  0x57   : > { %894 = vmatpush1.bf16.msra.mxu1 %v1448_v7  ;;  %842 = vmatprep.subr.bf16.mxu0 %v1449_v8  ;;  %v1466_v19 = vld [vmem:[#allocation6 + $0x130] ss:$8 sps:$4 sm:$0xff]   ;;  %v1469_v21 = vld [vmem:[#allocation6 + $0x124] ss:$8 sps:$4 sm:$0xff]   ;;  %v1471_v22 = vld [vmem:[#allocation6 + $0x20] ss:$8 sps:$4 sm:$0xff]  }
  0x58   : > { %895 = vmatprep.subr.bf16.mxu1 %v1451_v9  ;;  %v1472_v23 = vld [vmem:[#allocation6 + $0x120] ss:$8 sps:$4 sm:$0xff]   ;;  %v1473_v24 = vld [vmem:[#allocation6 + $0x14] ss:$8 sps:$4 sm:$0xff]   ;;  %v1477_v26 = vld [vmem:[#allocation6 + $0x10] ss:$8 sps:$4 sm:$0xff]  }
  0x59   : > { %v1475_v25 = vld [vmem:[#allocation6 + $0x114] ss:$8 sps:$4 sm:$0xff]   ;;  %v1478_v27 = vld [vmem:[#allocation6 + $0x110] ss:$8 sps:$4 sm:$0xff]   ;;  %v1479_v28 = vld [vmem:[#allocation6 + $0x4] ss:$8 sps:$4 sm:$0xff]  }
  0x5a   : > { %843 = vmatpush1.bf16.msra.mxu0 %v1453_v10  ;;  %v1481_v29 = vld [vmem:[#allocation6 + $0x104] ss:$8 sps:$4 sm:$0xff]   ;;  %v1483_v30 = vld [vmem:[#allocation6] ss:$8 sps:$4 sm:$0xff]   ;;  %v1485_v32 = vld [vmem:[#allocation6 + $0xf4] ss:$8 sps:$4 sm:$0xff]  }
  0x5b   : > { %896 = vmatpush1.bf16.msra.mxu1 %v1454_v11  ;;  %844 = vmatprep.subr.bf16.mxu0 %v1455_v12  ;;  %v1484_v31 = vld [vmem:[#allocation6 + $0x100] ss:$8 sps:$4 sm:$0xff]   ;;  %v1487_v33 = vld [vmem:[#allocation6 + $0x1f4] ss:$8 sps:$4 sm:$0xff]   ;;  %v1489_v34 = vld [vmem:[#allocation6 + $0xf0] ss:$8 sps:$4 sm:$0xff]  }
  0x5c   : > { %897 = vmatprep.subr.bf16.mxu1 %v1457_v13  ;;  %v1490_v35 = vld [vmem:[#allocation6 + $0x1f0] ss:$8 sps:$4 sm:$0xff]   ;;  %v1491_v36 = vld [vmem:[#allocation6 + $0xe4] ss:$8 sps:$4 sm:$0xff]   ;;  %v1495_v38 = vld [vmem:[#allocation6 + $0xe0] ss:$8 sps:$4 sm:$0xff]  }
  0x5d   : > { %v1493_v37 = vld [vmem:[#allocation6 + $0x1e4] ss:$8 sps:$4 sm:$0xff]   ;;  %v1496_v39 = vld [vmem:[#allocation6 + $0x1e0] ss:$8 sps:$4 sm:$0xff]   ;;  %v1497_v40 = vld [vmem:[#allocation6 + $0xd4] ss:$8 sps:$4 sm:$0xff]  }
  0x5e   : > { %845 = vmatpush1.bf16.msra.mxu0 %v1459_v14  ;;  %v1499_v41 = vld [vmem:[#allocation6 + $0x1d4] ss:$8 sps:$4 sm:$0xff]   ;;  %v1501_v42 = vld [vmem:[#allocation6 + $0xd0] ss:$8 sps:$4 sm:$0xff]   ;;  %v1503_v44 = vld [vmem:[#allocation6 + $0xc4] ss:$8 sps:$4 sm:$0xff]  }
  0x5f   : > { %898 = vmatpush1.bf16.msra.mxu1 %v1460_v15  ;;  %846 = vmatprep.subr.bf16.mxu0 %v1461_v16  ;;  %v1502_v43 = vld [vmem:[#allocation6 + $0x1d0] ss:$8 sps:$4 sm:$0xff]   ;;  %v1505_v45 = vld [vmem:[#allocation6 + $0x1c4] ss:$8 sps:$4 sm:$0xff]   ;;  %v1507_v46 = vld [vmem:[#allocation6 + $0xc0] ss:$8 sps:$4 sm:$0xff]  }
  0x60   : > { %899 = vmatprep.subr.bf16.mxu1 %v1463_v17  ;;  %v1508_v47 = vld [vmem:[#allocation6 + $0x1c0] ss:$8 sps:$4 sm:$0xff]   ;;  %v1509_v48 = vld [vmem:[#allocation6 + $0xb4] ss:$8 sps:$4 sm:$0xff]   ;;  %v1513_v52 = vld [vmem:[#allocation6 + $0xb0] ss:$8 sps:$4 sm:$0xff]  }
  0x61   : > { %v1535_v49 = vld [vmem:[%s1918_s4 + $0x4] ss:$20 sps:$4 sm:$0xff]   ;;  %v1538_v51 = vld [vmem:[%s1918_s4 + $0xc] ss:$20 sps:$4 sm:$0xff]   ;;  %v1536_v4 = vld [vmem:[%s1918_s4 + $0x8] ss:$20 sps:$4 sm:$0xff]  }
  0x62   : > { %847 = vmatpush1.bf16.msra.mxu0 %v1465_v18  ;;  %v1511_v50 = vld [vmem:[#allocation6 + $0x1b4] ss:$8 sps:$4 sm:$0xff]   ;;  %870 = vmatprep.mubr.bf16.mxu0 %v1535_v49  ;;  %v1514_v53 = vld [vmem:[#allocation6 + $0x1b0] ss:$8 sps:$4 sm:$0xff]   ;;  %v1515_v54 = vld [vmem:[#allocation6 + $0xa4] ss:$8 sps:$4 sm:$0xff]  }
  0x63   : > { %900 = vmatpush1.bf16.msra.mxu1 %v1466_v19  ;;  %848 = vmatprep.subr.bf16.mxu0 %v1467_v20  ;;  %v1517_v55 = vld [vmem:[#allocation6 + $0x1a4] ss:$8 sps:$4 sm:$0xff]   ;;  %v1519_v56 = vld [vmem:[#allocation6 + $0xa0] ss:$8 sps:$4 sm:$0xff]   ;;  %v1521_v58 = vld [vmem:[#allocation6 + $0x94] ss:$8 sps:$4 sm:$0xff]  }
  0x64   : > { %901 = vmatprep.subr.bf16.mxu1 %v1469_v21  ;;  %923 = vmatprep.mubr.bf16.mxu1 %v1538_v51  ;;  %v1520_v57 = vld [vmem:[#allocation6 + $0x1a0] ss:$8 sps:$4 sm:$0xff]   ;;  %v1523_v59 = vld [vmem:[#allocation6 + $0x194] ss:$8 sps:$4 sm:$0xff]   ;;  %v1525_v60 = vld [vmem:[#allocation6 + $0x90] ss:$8 sps:$4 sm:$0xff]  }
  0x65   : > { %v1526_v61 = vld [vmem:[#allocation6 + $0x190] ss:$8 sps:$4 sm:$0xff]   ;;  %v1527_v62 = vld [vmem:[#allocation6 + $0x84] ss:$8 sps:$4 sm:$0xff]   ;;  %v1531_v0 = vld [vmem:[#allocation6 + $0x80] ss:$8 sps:$4 sm:$0xff]  }
  0x66   : > { %849 = vmatpush1.bf16.msra.mxu0 %v1471_v22  ;;  %v1529_v63 = vld [vmem:[#allocation6 + $0x184] ss:$8 sps:$4 sm:$0xff]   ;;  %v1532_v1 = vld [vmem:[#allocation6 + $0x180] ss:$8 sps:$4 sm:$0xff]   ;;  %v1541_v2 = vld [vmem:[#allocation6 + $0x274] ss:$8 sps:$4 sm:$0xff]  }
  0x67   : > { %902 = vmatpush1.bf16.msra.mxu1 %v1472_v23  ;;  %850 = vmatprep.subr.bf16.mxu0 %v1473_v24  ;;  %v1533_v3 = vld [vmem:[%s1918_s4] ss:$20 sps:$4 sm:$0xff]   ;;  %v1558_v11 = vld [vmem:[%s1918_s4 + $0x28] ss:$20 sps:$4 sm:$0xff]   ;;  %v1559_v12 = vld [vmem:[%s1918_s4 + $0x30] ss:$20 sps:$4 sm:$0xff]  }
  0x68   : > { %903 = vmatprep.subr.bf16.mxu1 %v1475_v25  ;;  %v1539_v5 = vld [vmem:[#allocation6 + $0x270] ss:$8 sps:$4 sm:$0xff]   ;;  %v1544_v6 = vld [vmem:[#allocation6 + $0x264] ss:$8 sps:$4 sm:$0xff]   ;;  %v1542_v9 = vld [vmem:[#allocation6 + $0x260] ss:$8 sps:$4 sm:$0xff]  }
  0x69   : > { %v1554_v7 = vld [vmem:[%s1918_s4 + $0x2c] ss:$20 sps:$4 sm:$0xff]   ;;  %v1556_v8 = vld [vmem:[%s1918_s4 + $0x34] ss:$20 sps:$4 sm:$0xff]   ;;  %v1752_v17 = vmov 0   ;;  %s267_s22 = scalar_lea.vmem [#allocation9], %s1222_s20 }
  0x6a   : > { %851 = vmatpush1.bf16.msra.mxu0 %v1477_v26  ;;  %v1547_v10 = vld [vmem:[#allocation6 + $0x254] ss:$8 sps:$4 sm:$0xff]   ;;  %v1545_v13 = vld [vmem:[#allocation6 + $0x250] ss:$8 sps:$4 sm:$0xff]   ;;  %v1550_v14 = vld [vmem:[#allocation6 + $0x244] ss:$8 sps:$4 sm:$0xff]  }
  0x6b   : > { %904 = vmatpush1.bf16.msra.mxu1 %v1478_v27  ;;  %852 = vmatprep.subr.bf16.mxu0 %v1479_v28  ;;  %v1548_v15 = vld [vmem:[#allocation6 + $0x240] ss:$8 sps:$4 sm:$0xff]   ;;  %v1553_v16 = vld [vmem:[#allocation6 + $0x234] ss:$8 sps:$4 sm:$0xff]   ;;  %v1551_v18 = vld [vmem:[#allocation6 + $0x230] ss:$8 sps:$4 sm:$0xff]  }
  0x6c   : > { %905 = vmatprep.subr.bf16.mxu1 %v1481_v29  ;;  %v1562_v19 = vld [vmem:[#allocation6 + $0x224] ss:$8 sps:$4 sm:$0xff]   ;;  %v1560_v20 = vld [vmem:[#allocation6 + $0x220] ss:$8 sps:$4 sm:$0xff]   ;;  %v1565_v21 = vld [vmem:[#allocation6 + $0x214] ss:$8 sps:$4 sm:$0xff]  }
  0x6d   : > { %v1563_v22 = vld [vmem:[#allocation6 + $0x210] ss:$8 sps:$4 sm:$0xff]   ;;  %v1568_v23 = vld [vmem:[#allocation6 + $0x204] ss:$8 sps:$4 sm:$0xff]   ;;  %v1566_v24 = vld [vmem:[#allocation6 + $0x200] ss:$8 sps:$4 sm:$0xff]  }
  0x6e   : > { %853 = vmatpush1.bf16.msra.mxu0 %v1483_v30  ;;  %v1569_v25 = vld [vmem:[%s1918_s4 + $0x10] ss:$20 sps:$4 sm:$0xff]   ;;  %v1570_v26 = vld [vmem:[%s1918_s4 + $0x38] ss:$20 sps:$4 sm:$0xff]   ;;  %s1091_s26 = sshll.u32 %s267_s22, 4  ;;  %s1330_s7 = sshll.u32 %s1733_s15, 9  ;;  %s1955_s26 = int_to_ptr.vmem [resolvable:$true] %s1091_s26 }
  0x6f   : > { %906 = vmatpush1.bf16.msra.mxu1 %v1484_v31  ;;  %854 = vmatprep.subr.bf16.mxu0 %v1485_v32  ;;  %s1960_s10 = scalar_lea.hbm %s2011_s3, %s1330_s7  ;;  %s1077_s15 = scalar_lea.sflag [#allocation5], %s1915_s21 }
  0x70   : > { %907 = vmatprep.subr.bf16.mxu1 %v1487_v33  ;;  %s1653_s19 = scalar_lea.vmem %s1955_s26, 512  ;;  %s1753_s8 = smov [#allocation9]  }
  0x71   : > { %p1654_p11 = scmp.ne.s32.totalorder %s1955_s26, %s1653_s19  ;;  %s1657_s28 = sshll.u32 %s1753_s8, 4  ;;  %s1658_s28 = int_to_ptr.vmem [resolvable:$false] %s1657_s28 }
  0x72   : > { %855 = vmatpush2.bf16.msra.mxu0 %v1489_v34  ;;  %s1659_s5 = scalar_lea.vmem %s1658_s28, 1024  ;;  %p1660_p6 = scmp.lt.s32.totalorder %s1955_s26, %s1658_s28 }
  0x73   : > { %908 = vmatpush2.bf16.msra.mxu1 %v1490_v35  ;;  %856 = vmatprep.subr.bf16.mxu0 %v1491_v36  ;;  %p1655_p1 = pnand %p1654_p11, %p1863_p12  ;;  %p1661_p9 = scmp.lt.s32.totalorder %s1659_s5, %s1653_s19 }
  0x74   : > { %909 = vmatprep.subr.bf16.mxu1 %v1493_v37 }
  0x75   : > { %p1656_p4 = pneg %p1655_p1  ;;  %p1662_p8 = por %p1661_p9, %p1660_p6 }
  0x76   : > { %857 = vmatpush2.bf16.msra.mxu0 %v1495_v38 }
  0x77   : > { %910 = vmatpush2.bf16.msra.mxu1 %v1496_v39  ;;  %858 = vmatprep.subr.bf16.mxu0 %v1497_v40  ;;  %p1663_p5 = pnand %p1662_p8, %p1656_p4 }
  0x78   : > { %911 = vmatprep.subr.bf16.mxu1 %v1499_v41 }
  0x7a   : > { %859 = vmatpush2.bf16.msra.mxu0 %v1501_v42 }
  0x7b   : > { %912 = vmatpush2.bf16.msra.mxu1 %v1502_v43  ;;  %860 = vmatprep.subr.bf16.mxu0 %v1503_v44 }
  0x7c   : > { %913 = vmatprep.subr.bf16.mxu1 %v1505_v45 }
  0x7e   : > { %861 = vmatpush2.bf16.msra.mxu0 %v1507_v46  ;;  %v1024_v46 = vld [vmem:[%s1929_s6] sm:$0xff] }
  0x7f   : > { %914 = vmatpush2.bf16.msra.mxu1 %v1508_v47  ;;  %862 = vmatprep.subr.bf16.mxu0 %v1509_v48  ;;  %v1028_v48 = vld [vmem:[%s1929_s6 + $0x20] sm:$0xff] }
  0x80   : > { %915 = vmatprep.subr.bf16.mxu1 %v1511_v50 }
  0x82   : > { %863 = vmatpush2.bf16.msra.mxu0 %v1513_v52 }
  0x83   : > { %916 = vmatpush2.bf16.msra.mxu1 %v1514_v53  ;;  %864 = vmatprep.subr.bf16.mxu0 %v1515_v54  ;;  %v1025_v54 = vld [vmem:[%s1929_s6 + $0x8] sm:$0xff] }
  0x84   : > { %917 = vmatprep.subr.bf16.mxu1 %v1517_v55 }
  0x86   : > { %865 = vmatpush2.bf16.msra.mxu0 %v1519_v56  ;;  %v1029_v56 = vld [vmem:[%s1929_s6 + $0x28] sm:$0xff] }
  0x87   : > { %918 = vmatpush2.bf16.msra.mxu1 %v1520_v57  ;;  %866 = vmatprep.subr.bf16.mxu0 %v1521_v58 }
  0x88   : > { %919 = vmatprep.subr.bf16.mxu1 %v1523_v59 }
  0x8a   : > { %867 = vmatpush2.bf16.msra.mxu0 %v1525_v60 }
  0x8b   : > { %920 = vmatpush2.bf16.msra.mxu1 %v1526_v61  ;;  %868 = vmatprep.subr.bf16.mxu0 %v1527_v62 }
  0x8c   : > { %921 = vmatprep.subr.bf16.mxu1 %v1529_v63 }
  0x8e   : > { %869 = vmatpush2.bf16.msra.mxu0 %v1531_v0 }
  0x8f   : > { %922 = vmatpush2.bf16.msra.mxu1 %v1532_v1  ;;  %944 = vmatprep.subr.bf16.mxu0 %v1541_v2 }
  0x90   : > { %1331 = vmatprep.subr.bf16.mxu1 %v1541_v2 }
  0x91   : > { %871 = vmatmul.mubr.bf16.vlgmr.msra.gmra.mxu0 %v1533_v3 }
  0x92   : > { %924 = vmatmul.mubr.bf16.vlgmr.msra.gmra.mxu1 %v1536_v4  ;;  %945 = vmatpush1.bf16.msra.mxu0 %v1539_v5 }
  0x93   : > { %1339 = vmatpush1.bf16.msra.mxu1 %v1539_v5  ;;  %946 = vmatprep.subr.bf16.mxu0 %v1544_v6  ;;  %v1026_v5 = vld [vmem:[%s1929_s6 + $0x10] sm:$0xff] }
  0x94   : > { %1332 = vmatprep.subr.bf16.mxu1 %v1544_v6  ;;  %880 = vmatprep.mubr.bf16.mxu0 %v1554_v7  ;;  %v1030_v6 = vld [vmem:[%s1929_s6 + $0x30] sm:$0xff] }
  0x95   : > { %933 = vmatprep.mubr.bf16.mxu1 %v1556_v8 }
  0x96   : > { %947 = vmatpush1.bf16.msra.mxu0 %v1542_v9 }
  0x97   : > { %1340 = vmatpush1.bf16.msra.mxu1 %v1542_v9  ;;  %948 = vmatprep.subr.bf16.mxu0 %v1547_v10 }
  0x98   : > { %1333 = vmatprep.subr.bf16.mxu1 %v1547_v10 }
  0x99   : > { %881 = vmatmul.mubr.bf16.gmra.mxu0 %v1558_v11 }
  0x9a   : > { %934 = vmatmul.mubr.bf16.gmra.mxu1 %v1559_v12  ;;  %949 = vmatpush1.bf16.msra.mxu0 %v1545_v13  ;;  %v1027_v12 = vld [vmem:[%s1929_s6 + $0x18] sm:$0xff] }
  0x9b   : > { %1341 = vmatpush1.bf16.msra.mxu1 %v1545_v13  ;;  %950 = vmatprep.subr.bf16.mxu0 %v1550_v14 }
  0x9c   : > { %1334 = vmatprep.subr.bf16.mxu1 %v1550_v14  ;;  %976 = vmatprep.mubr.bf16.mxu0 %v1752_v17  ;;  %v1031_v14 = vld [vmem:[%s1929_s6 + $0x38] sm:$0xff] }
  0x9d   : > { %986 = vmatprep.mubr.bf16.mxu1 %v1752_v17 }
  0x9e   : > { %951 = vmatpush1.bf16.msra.mxu0 %v1548_v15 }
  0x9f   : > { %1342 = vmatpush1.bf16.msra.mxu1 %v1548_v15  ;;  %952 = vmatprep.subr.bf16.mxu0 %v1553_v16 }
  0xa0   : > { %1335 = vmatprep.subr.bf16.mxu1 %v1553_v16 }
  0xa2   : > { %953 = vmatpush1.bf16.msra.mxu0 %v1551_v18 }
  0xa3   : > { %1343 = vmatpush1.bf16.msra.mxu1 %v1551_v18  ;;  %954 = vmatprep.subr.bf16.mxu0 %v1562_v19 }
  0xa4   : > { %1336 = vmatprep.subr.bf16.mxu1 %v1562_v19 }
  0xa6   : > { %955 = vmatpush1.bf16.msra.mxu0 %v1560_v20 }
  0xa7   : > { %1344 = vmatpush1.bf16.msra.mxu1 %v1560_v20  ;;  %956 = vmatprep.subr.bf16.mxu0 %v1565_v21 }
  0xa8   : > { %1337 = vmatprep.subr.bf16.mxu1 %v1565_v21 }
  0xaa   : > { %957 = vmatpush1.bf16.msra.mxu0 %v1563_v22 }
  0xab   : > { %1345 = vmatpush1.bf16.msra.mxu1 %v1563_v22  ;;  %958 = vmatprep.subr.bf16.mxu0 %v1568_v23 }
  0xac   : > { %1338 = vmatprep.subr.bf16.mxu1 %v1568_v23 }
  0xae   : > { %959 = vmatpush1.bf16.msra.mxu0 %v1566_v24 }
  0xaf   : > { %1346 = vmatpush1.bf16.msra.mxu1 %v1566_v24 }
  0xb1   : > { %977 = vmatmul.mubr.bf16.vlgmr.msra.gmra.mxu0 %v1569_v25 }
  0xb2   : > { %987 = vmatmul.mubr.bf16.vlgmr.msra.gmra.mxu1 %v1570_v26 }
 0x151   : > { %v872_v27 = vpop.f32.mrf.mxu0 }
 0x152   : > { %v925_v28 = vpop.f32.mrf.mxu1 }
 0x153   : > { %v874_v29 = vpop.f32.mrf.mxu0  ;;  %v926_v43 = vadd.f32 %v925_v28, %v872_v27 }
 0x154   : > { %v927_v30 = vpop.f32.mrf.mxu1 }
 0x155   : > { %v876_v31 = vpop.f32.mrf.mxu0  ;;  %v928_v49 = vadd.f32 %v927_v30, %v874_v29 }
 0x156   : > { %v929_v32 = vpop.f32.mrf.mxu1 }
 0x157   : > { %v878_v33 = vpop.f32.mrf.mxu0  ;;  %v930_v61 = vadd.f32 %v929_v32, %v876_v31 }
 0x158   : > { %v931_v34 = vpop.f32.mrf.mxu1 }
 0x159   : > { %v882_v35 = vpop.f32.mrf.mxu0  ;;  %v932_v1 = vadd.f32 %v931_v34, %v878_v33 }
 0x15a   : > { %v935_v36 = vpop.f32.mrf.mxu1 }
 0x15b   : > { %v884_v37 = vpop.f32.mrf.mxu0  ;;  %v936_v44 = vadd.f32 %v935_v36, %v882_v35 }
 0x15c   : > { %v937_v38 = vpop.f32.mrf.mxu1 }
 0x15d   : > { %v886_v39 = vpop.f32.mrf.mxu0  ;;  %v938_v50 = vadd.f32 %v937_v38, %v884_v37 }
 0x15e   : > { %v939_v40 = vpop.f32.mrf.mxu1 }
 0x15f   : > { %v888_v41 = vpop.f32.mrf.mxu0  ;;  %v940_v62 = vadd.f32 %v939_v40, %v886_v39 }
 0x160   : > { %v941_v42 = vpop.f32.mrf.mxu1 }
 0x161   : > { %v942_v2 = vadd.f32 %v941_v42, %v888_v41 }
 0x171   : > { %v978_v45 = vpop.f32.mrf.mxu0 }
 0x172   : > { %v988_v47 = vpop.f32.mrf.mxu1  ;;  %v979_v51 = vadd.f32 %v978_v45, %v926_v43 }
 0x173   : > { %v989_v52 = vadd.f32 %v988_v47, %v936_v44  ;;  %v980_v53 = vpop.f32.mrf.mxu0 }
 0x174   : > { %v990_v55 = vpop.f32.mrf.mxu1  ;;  %v1032_v57 = vadd.f32 %v1024_v46, %v979_v51  ;;  %v981_v59 = vadd.f32 %v980_v53, %v928_v49 }
 0x175   : > { %v1036_v58 = vadd.f32 %v1028_v48, %v989_v52  ;;  %v991_v60 = vadd.f32 %v990_v55, %v938_v50  ;;  %v982_v63 = vpop.f32.mrf.mxu0 }
 0x176   : > { %v992_v0 = vpop.f32.mrf.mxu1  ;;  %v1033_v3 = vadd.f32 %v1025_v54, %v981_v59  ;;  %v1040_v7 = vmax.f32 %v1032_v57, 0.0  ;;  %v983_v9 = vadd.f32 %v982_v63, %v930_v61 }
 0x177   : > { %v1037_v4 = vadd.f32 %v1029_v56, %v991_v60  ;;  %v1044_v8 = vmax.f32 %v1036_v58, 0.0  ;;  %v993_v10 = vadd.f32 %v992_v0, %v940_v62  ;;  %v984_v11 = vpop.f32.mrf.mxu0 }
 0x178   : > { %v994_v13 = vpop.f32.mrf.mxu1  ;;  %v1041_v15 = vmax.f32 %v1033_v3, 0.0  ;;  %v985_v17 = vadd.f32 %v984_v11, %v932_v1  ;;  %v1034_v19 = vadd.f32 %v1026_v5, %v983_v9 }
 0x179   : > { %v1045_v16 = vmax.f32 %v1037_v4, 0.0  ;;  %v995_v18 = vadd.f32 %v994_v13, %v942_v2  ;;  %v1038_v20 = vadd.f32 %v1030_v6, %v993_v10 }
 0x17a   : > { %v1325_v21 = vpack.c.bf16 %v1041_v15, %v1040_v7  ;;  %v1035_v23 = vadd.f32 %v1027_v12, %v985_v17  ;;  %v1042_v25 = vmax.f32 %v1034_v19, 0.0 }
 0x17b   : > { %v1327_v22 = vpack.c.bf16 %v1045_v16, %v1044_v8  ;;  %v1039_v24 = vadd.f32 %v1031_v14, %v995_v18  ;;  %v1046_v26 = vmax.f32 %v1038_v20, 0.0 }
 0x17c   : > { %1072 = vst [vmem:[%s267_s22] sm:$0xff] %v1325_v21  ;;  %v1043_v27 = vmax.f32 %v1035_v23, 0.0 }
 0x17d   : > { %1074 = vst [vmem:[%s267_s22 + $0x10] sm:$0xff] %v1327_v22  ;;  %v1047_v28 = vmax.f32 %v1039_v24, 0.0 }
 0x17e   : > { %v1326_v29 = vpack.c.bf16 %v1043_v27, %v1042_v25 }
 0x17f   : > { %v1328_v30 = vpack.c.bf16 %v1047_v28, %v1046_v26 }
 0x180   : > { %1073 = vst [vmem:[%s267_s22 + $0x8] sm:$0xff] %v1326_v29 }
 0x181   : > { %1075 = vst [vmem:[%s267_s22 + $0x18] sm:$0xff] %v1328_v30 }
 0x182   : > { %1666 = shalt.err (!%p1663_p5)
}
 0x183   : > { %s1667_s27 = scalar_lea.hbm %s1960_s10, 512  ;;  %s1671_s29 = scalar_lea.hbm %s2011_s3, 1024 }
 0x184   : > { %p1668_p10 = scmp.ne.s32.totalorder %s1960_s10, %s1667_s27  ;;  %p1672_p7 = scmp.lt.s32.totalorder %s1960_s10, %s2011_s3 }
 0x185   : > { %p1673_p2 = scmp.lt.s32.totalorder %s1671_s29, %s1667_s27 }
 0x186   : > { %p1669_p0 = pnand %p1668_p10, %p1863_p12 }
 0x187   : > { %p1674_p11 = por %p1673_p2, %p1672_p7 }
 0x188   : > { %p1670_p3 = pneg %p1669_p0 }
 0x18a   : > { %p1675_p1 = pnand %p1674_p11, %p1670_p3 }
 0x18c   : > { %1678 = shalt.err (!%p1675_p1)
}
 0x18d   : > { %s1754_s22 = smov 128   ;;  %s1755_s7 = smov 8  }
 0x18e   : > { %1358 = dma.vmem_to_hbm [thread:$0]  (%p1863_p12), %s1955_s26, 512, %s1960_s10, %s1077_s15, %s1754_s22, %s1754_s22, %s1755_s7  }
 0x18f PF: > { %s1106_s11 = sand.u32 1, %s1721_s12   ;;  %p2023_p4 = scmp.ge.s32.totalorder %s1741_s17, 2 }
 0x190   : > { %s1107_s9 = scalar_lea.sflag [#allocation5], %s1106_s11 }
 0x191   : > { %p1372_p6 = pnand %p2023_p4, %p1867_p13 }
 0x193   : > { %p1373_p9 = pneg %p1372_p6 }
 0x195   : > { %1716 = dma.done.wait (%p1373_p9), %s1107_s9, 512  }
 0x196   : > { %1718 = vsyncadd (%p1373_p9), %s1107_s9, 4294966784  ;;  %s20_s17 = sadd.s32 1, %s1741_s17   ;;  %s2024_s12 = smov %s1725_s13 }
 0x197   : > { %p17_p8 = scmp.ge.s32.totalorder %s20_s17, 4   ;;  %s2025_s13 = smov %s1729_s14 }
 0x198   : > { %s2026_s14 = smov %s1824_s24  ;;  %s2027_s15 = smov %s1737_s16 }
 0x199   : > { %s2028_s16 = smov %s2030_s18  ;;  %19 = sbr.rel (!%p17_p8) target bundleno = 7 (0x7), region = 101 }
 0x19e   :  { %1112 = vsyncpa [#allocation4], 1 }
 0x19f   :  { %1114 = vsyncpa [#allocation4 + $0x1], 1 }
 0x1a0   :  { %1115 = vsyncpa [#allocation7], 1 }
 0x1a1   :  { %1116 = vsyncpa [#allocation5], 1 }
 0x1a2   :  { %1118 = vsyncpa [#allocation5 + $0x1], 1 }

</bundles_post_ra>
